<compile_context>
chip_gen: v6e
topology: v6e:2x2x1
jax: 0.10.0
libtpu: 0.0.40
codegen_flags: <defaults>
</compile_context>

<pallas_src>
import jax
import jax.numpy as jnp
from jax.experimental import pallas as pl
from jax.experimental.pallas import tpu as pltpu


def _round_up(v, m):
    return (v + m - 1) // m * m


def _vmem_capacity_bytes():
    """Per-core VMEM capacity (generation-aware); conservative fallback."""
    try:
        return int(pltpu.get_tpu_info().vmem_capacity_bytes)
    except Exception:
        return 64 << 20  # v7x per-core VMEM; safe lower bound everywhere


def _apply_sigmoid(s, approx):
    if approx:
        # exp + reciprocal both land in the EUP slot -> frees the VPU when the
        # epilogue (not the MXU) is the binding unit (small-D regime).
        return pl.reciprocal(1.0 + jnp.exp(-s), approx=True)
    return jax.nn.sigmoid(s)


def _make_resident_kernel(mm_dtype, gate_in_f32, approx_sigmoid):
    """Whole-D kernel: W1/W2 are VMEM-resident, grid tiles the batch only."""
    def kernel(x_ref, w1_ref, b1_ref, w2_ref, b2_ref, o_ref):
        x = x_ref[...]
        h = jnp.dot(x.astype(mm_dtype), w1_ref[...],
                    preferred_element_type=jnp.float32)
        h = jnp.maximum(h + b1_ref[...].astype(jnp.float32), 0.0)
        s = jnp.dot(h.astype(mm_dtype), w2_ref[...],
                    preferred_element_type=jnp.float32)
        s = _apply_sigmoid(s + b2_ref[...].astype(jnp.float32), approx_sigmoid)
        if gate_in_f32:
            o_ref[...] = (x.astype(jnp.float32) * s).astype(o_ref.dtype)
        else:
            o_ref[...] = x * s.astype(x.dtype)
    return kernel


def _make_stream_kernel(mm_dtype, gate_in_f32, approx_sigmoid):
    """Weight-streaming kernel: inner 'arbitrary' axis j streams a W1 column
    tile and a W2 row tile per step; the second matmul accumulates in an f32
    VMEM scratch, and the output is produced on the last j step."""
    def kernel(x_ref, w1_ref, b1_ref, w2_ref, b2_ref, o_ref, acc_ref):
        j = pl.program_id(1)

        @pl.when(j == 0)
        def _():
            acc_ref[...] = jnp.zeros_like(acc_ref)

        x = x_ref[...]
        # h column-block j: relu(x @ W1[:, j_tile] + b1[j_tile])
        h = jnp.dot(x.astype(mm_dtype), w1_ref[...],
                    preferred_element_type=jnp.float32)
        h = jnp.maximum(h + b1_ref[...].astype(jnp.float32), 0.0)
        # accumulate its contribution to the second matmul: acc += h_j @ W2[j_tile, :]
        acc_ref[...] += jnp.dot(h.astype(mm_dtype), w2_ref[...],
                                preferred_element_type=jnp.float32)

        @pl.when(j == pl.num_programs(1) - 1)
        def _():
            s = _apply_sigmoid(acc_ref[...] + b2_ref[...].astype(jnp.float32),
                               approx_sigmoid)
            if gate_in_f32:
                o_ref[...] = (x.astype(jnp.float32) * s).astype(o_ref.dtype)
            else:
                o_ref[...] = x * s.astype(x.dtype)
    return kernel


def prepare_se_params(w1, b1, w2, b2, input_dim, *, use_bf16_matmul=False):
    """Pad parameters to the 128-aligned feature dim ONCE (and optionally cast
    the weights to bf16) so se_block does no per-call padding / casting."""
    Dp = _round_up(input_dim, 128)
    if b1.ndim == 1:
        b1 = b1[None, :]
    if b2.ndim == 1:
        b2 = b2[None, :]
    w1 = jnp.pad(w1, ((0, Dp - w1.shape[0]), (0, Dp - w1.shape[1])))
    w2 = jnp.pad(w2, ((0, Dp - w2.shape[0]), (0, Dp - w2.shape[1])))
    b1 = jnp.pad(b1, ((0, 0), (0, Dp - b1.shape[1])))
    b2 = jnp.pad(b2, ((0, 0), (0, Dp - b2.shape[1])))
    if use_bf16_matmul and w1.dtype == jnp.float32:
        w1 = w1.astype(jnp.bfloat16)
        w2 = w2.astype(jnp.bfloat16)
    return w1, b1, w2, b2


def se_block(x, w1, b1, w2, b2, *, block_b=None, use_bf16_matmul=False,
             approx_sigmoid=False, donate_x=False, force_stream=False):
    """x: (B, D); w1/w2: (D, D) in (in, out) layout; b1/b2: (1, D).

    Parameters may be pre-padded / pre-cast with prepare_se_params(), in which
    case the per-call path does no weight padding."""
    B, D = x.shape
    dtype = x.dtype
    itemsize = jnp.dtype(dtype).itemsize
    quantum = 16 if itemsize == 2 else 8          # sublane quantum

    Dp = _round_up(D, 128)                        # lane-dense feature dim

    # ---- parameters: pad only if the caller did not pre-pad ---------------
    if b1.ndim == 1:
        b1 = b1[None, :]
    if b2.ndim == 1:
        b2 = b2[None, :]
    if (w1.shape != (Dp, Dp) or w2.shape != (Dp, Dp)
            or b1.shape != (1, Dp) or b2.shape != (1, Dp)):
        w1, b1, w2, b2 = prepare_se_params(w1, b1, w2, b2, D)
    if use_bf16_matmul and w1.dtype == jnp.float32:
        w1 = w1.astype(jnp.bfloat16)
        w2 = w2.astype(jnp.bfloat16)
    mm_dtype = w1.dtype
    w_itemsize = jnp.dtype(mm_dtype).itemsize

    # ---- batch tile --------------------------------------------------------
    if block_b is None:
        if Dp <= 512:
            # Small D: weights are trivially resident -> HBM / per-step
            # overhead bound.  Target ~1 MiB x tiles (measured ~85% roofline).
            rows = max(quantum, (1 << 20) // (Dp * itemsize))
            block_b = min(_round_up(B, quantum),
                          min(_round_up(rows, quantum), 1024))
        else:
            block_b = min(_round_up(B, quantum), 256)  # fill the MXU M dim
        # Guarantee >= 2 batch steps when B allows, so the "parallel" axis can
        # shard across both v7x TensorCores and the DMA pipeline overlaps.
        if B >= 2 * quantum:
            block_b = min(block_b, _round_up(pl.cdiv(B, 2), quantum))
    block_b = max(quantum, _round_up(block_b, quantum))

    # ---- generation-aware per-core VMEM budget -----------------------------
    vmem_cap = _vmem_capacity_bytes()
    budget = int(vmem_cap * 0.85)    # ~108 MiB on v5e/v6e (128), ~54 MiB on v7x (64)

    n_b = _round_up(B, block_b) // block_b
    x_buf = 3 if (Dp <= 512 and n_b >= 3) else 2

    resident_need = (2 * Dp * Dp * w_itemsize                  # W1+W2, 1 buffer each
                     + 4 * Dp * 4                              # biases
                     + (x_buf + 2) * block_b * Dp * itemsize   # x + out pipelines
                     + 4 * block_b * Dp * 4)                   # f32 temporaries

    use_stream = force_stream or resident_need > budget
    gate_in_f32 = itemsize == 4
    io_alias = {0: 0} if donate_x else {}

    # ======================= resident-weight path ==========================
    if not use_stream:
        Bp = _round_up(B, block_b)
        if (Bp, Dp) != (B, D):
            x = jnp.pad(x, ((0, Bp - B), (0, Dp - D)))
        vmem_limit = min(budget,
                         max(int(resident_need * 1.25) + (2 << 20), 32 << 20))
        cost = pl.CostEstimate(
            flops=4 * Bp * Dp * Dp + Bp * Dp,        # two matmuls + gate mul
            transcendentals=2 * Bp * Dp,             # sigmoid = exp + reciprocal
            bytes_accessed=2 * Bp * Dp * itemsize + 2 * Dp * Dp * w_itemsize,
        )
        resident = dict(pipeline_mode=pl.Buffered(1))   # constant block index
        x_mode = dict(pipeline_mode=pl.Buffered(x_buf)) if x_buf != 2 else {}
        out_p = pl.pallas_call(
            _make_resident_kernel(mm_dtype, gate_in_f32, approx_sigmoid),
            out_shape=jax.ShapeDtypeStruct((Bp, Dp), dtype),
            grid_spec=pltpu.PrefetchScalarGridSpec(
                num_scalar_prefetch=0,
                grid=(Bp // block_b,),
                in_specs=[
                    pl.BlockSpec((block_b, Dp), lambda i: (i, 0), **x_mode),
                    pl.BlockSpec((Dp, Dp), lambda i: (0, 0), **resident),   # W1
                    pl.BlockSpec((1, Dp), lambda i: (0, 0), **resident),    # b1
                    pl.BlockSpec((Dp, Dp), lambda i: (0, 0), **resident),   # W2
                    pl.BlockSpec((1, Dp), lambda i: (0, 0), **resident),    # b2
                ],
                out_specs=pl.BlockSpec((block_b, Dp), lambda i: (i, 0)),
            ),
            compiler_params=pltpu.CompilerParams(
                dimension_semantics=("parallel",),
                vmem_limit_bytes=vmem_limit,
            ),
            cost_estimate=cost,
            input_output_aliases=io_alias,
        )(x, w1, b1, w2, b2)
        return out_p[:B, :D]

    # ======================= weight-streaming path =========================
    def stream_need(bb, td):
        return (4 * Dp * td * w_itemsize          # W1 col + W2 row tiles, 2-buffered
                + 2 * td * 4 + 2 * Dp * 4         # bias tiles
                + 4 * bb * Dp * itemsize          # x + out, double-buffered
                + bb * Dp * 4                     # f32 accumulator scratch
                + 3 * bb * td * 4)                # f32 h temporaries

    m = Dp // 128
    bb, td, found = block_b, 128, False
    while True:
        for nj in range(1, m + 1):                # nj inner steps, td = Dp // nj
            if m % nj:
                continue
            if force_stream and m >= 2 and nj < 2:
                continue                          # make sure we really stream
            t = Dp // nj
            if stream_need(bb, t) <= budget:
                td, found = t, True
                break
        if found or bb <= quantum:
            break
        bb = max(quantum, _round_up(bb // 2, quantum))   # shrink batch tile, retry
    block_b = bb
    Bp = _round_up(B, block_b)
    if (Bp, Dp) != (B, D):
        x = jnp.pad(x, ((0, Bp - B), (0, Dp - D)))

    n_b = Bp // block_b
    vmem_limit = min(budget,
                     max(int(stream_need(block_b, td) * 1.25) + (2 << 20), 32 << 20))
    cost = pl.CostEstimate(
        flops=4 * Bp * Dp * Dp + Bp * Dp,
        transcendentals=2 * Bp * Dp,
        bytes_accessed=2 * Bp * Dp * itemsize + n_b * 2 * Dp * Dp * w_itemsize,
    )

    out_p = pl.pallas_call(
        _make_stream_kernel(mm_dtype, gate_in_f32, approx_sigmoid),
        out_shape=jax.ShapeDtypeStruct((Bp, Dp), dtype),
        grid_spec=pltpu.PrefetchScalarGridSpec(
            num_scalar_prefetch=0,
            grid=(n_b, Dp // td),
            in_specs=[
                pl.BlockSpec((block_b, Dp), lambda i, j: (i, 0)),   # x (resident over j)
                pl.BlockSpec((Dp, td), lambda i, j: (0, j)),        # W1 column tile
                pl.BlockSpec((1, td), lambda i, j: (0, j)),         # b1 tile
                pl.BlockSpec((td, Dp), lambda i, j: (j, 0)),        # W2 row tile
                pl.BlockSpec((1, Dp), lambda i, j: (0, 0)),         # b2
            ],
            out_specs=pl.BlockSpec((block_b, Dp), lambda i, j: (i, 0)),
            scratch_shapes=[pltpu.VMEM((block_b, Dp), jnp.float32)],
        ),
        compiler_params=pltpu.CompilerParams(
            dimension_semantics=("parallel", "arbitrary"),
            vmem_limit_bytes=vmem_limit,
        ),
        cost_estimate=cost,
        input_output_aliases=io_alias,
    )(x, w1, b1, w2, b2)
    return out_p[:B, :D]


def init_se_params(key, input_dim, dtype=jnp.float32):
    """Deterministic init mimicking torch.nn.Linear (U(-1/sqrt(in), 1/sqrt(in)))."""
    k1, k2, k3, k4 = jax.random.split(key, 4)
    bound = 1.0 / (input_dim ** 0.5)
    # Stored directly in (in_dim, out_dim) layout (i.e. PyTorch weight.T).
    w1 = jax.random.uniform(k1, (input_dim, input_dim), dtype, -bound, bound)
    b1 = jax.random.uniform(k2, (1, input_dim), dtype, -bound, bound)
    w2 = jax.random.uniform(k3, (input_dim, input_dim), dtype, -bound, bound)
    b2 = jax.random.uniform(k4, (1, input_dim), dtype, -bound, bound)
    return w1, b1, w2, b2


def se_block_ref(x, w1, b1, w2, b2):
    """Pure-JAX reference of the PyTorch forward (for correctness check)."""
    h = jnp.maximum(x @ w1 + b1, 0.0)
    s = jax.nn.sigmoid(h @ w2 + b2)
    return x * s


if __name__ == "__main__":
    key = jax.random.PRNGKey(0)
    kx, kp, kx2, kp2 = jax.random.split(key, 4)

    # --- Test 1: resident-weight path, exact f32 semantics ------------------
    B, D = 32, 32
    x = jax.random.normal(kx, (B, D), jnp.float32)
    w1, b1, w2, b2 = init_se_params(kp, D)
    out = jax.block_until_ready(se_block(x, w1, b1, w2, b2))
    ref = se_block_ref(x, w1, b1, w2, b2)
    assert out.shape == (B, D) and out.dtype == x.dtype
    assert jnp.allclose(out, ref, atol=1e-5, rtol=1e-5)

    # --- Test 2: forced weight-streaming path (inner "arbitrary" axis) ------
    B2, D2 = 48, 256
    x2 = jax.random.normal(kx2, (B2, D2), jnp.float32)
    p2 = init_se_params(kp2, D2)
    out2 = jax.block_until_ready(se_block(x2, *p2, force_stream=True))
    ref2 = se_block_ref(x2, *p2)
    assert out2.shape == (B2, D2)
    assert jnp.allclose(out2, ref2, atol=1e-4, rtol=1e-4)

    # --- Test 3: opt-in bf16 MXU matmuls on pre-padded / pre-cast params ----
    pw1, pb1, pw2, pb2 = prepare_se_params(w1, b1, w2, b2, D, use_bf16_matmul=True)
    out3 = jax.block_until_ready(
        se_block(x, pw1, pb1, pw2, pb2, use_bf16_matmul=True))
    assert jnp.allclose(out3, ref, atol=5e-2, rtol=5e-2)

    print("KERNEL_OK")
</pallas_src>

<mosaic_0001>
module attributes {stable_mosaic.version = 11 : i64} {
  func.func @kernel(%arg0: i32, %arg1: memref<16x128xf32, #tpu.memory_space<vmem>>, %arg2: memref<128x128xf32, #tpu.memory_space<vmem>>, %arg3: memref<1x128xf32, #tpu.memory_space<vmem>>, %arg4: memref<128x128xf32, #tpu.memory_space<vmem>>, %arg5: memref<1x128xf32, #tpu.memory_space<vmem>>, %arg6: memref<16x128xf32, #tpu.memory_space<vmem>>) attributes {dimension_semantics = [#tpu.dimension_semantics<parallel>], iteration_bounds = array<i64: 2>, scalar_prefetch = 0 : i64, scratch_operands = 0 : i64, tpu.core_type = #tpu.core_type<tc>, window_params = [{transform_indices = @transform_0, window_bounds = array<i64: 16, 128>}, {pipeline_mode = #tpu.pipeline_mode<synchronous>, transform_indices = @transform_1, window_bounds = array<i64: 128, 128>}, {pipeline_mode = #tpu.pipeline_mode<synchronous>, transform_indices = @transform_2, window_bounds = array<i64: 1, 128>}, {pipeline_mode = #tpu.pipeline_mode<synchronous>, transform_indices = @transform_3, window_bounds = array<i64: 128, 128>}, {pipeline_mode = #tpu.pipeline_mode<synchronous>, transform_indices = @transform_4, window_bounds = array<i64: 1, 128>}, {transform_indices = @transform_5, window_bounds = array<i64: 16, 128>}]} {
    %c0 = arith.constant 0 : index
    %c0_0 = arith.constant 0 : index
    %0 = vector.load %arg1[%c0, %c0_0] : memref<16x128xf32, #tpu.memory_space<vmem>>, vector<16x128xf32>
    %c0_1 = arith.constant 0 : index
    %c0_2 = arith.constant 0 : index
    %1 = vector.load %arg2[%c0_1, %c0_2] : memref<128x128xf32, #tpu.memory_space<vmem>>, vector<128x128xf32>
    %cst = arith.constant dense<0.000000e+00> : vector<16x128xf32>
    %2 = tpu.matmul %0, %1, %cst {dimension_numbers = #tpu.dot_dimension_numbers<[1], [0], [0], [1], [0, 0, 1, 1], [], []>} : vector<16x128xf32>, vector<128x128xf32>, vector<16x128xf32> -> vector<16x128xf32>
    %c0_3 = arith.constant 0 : index
    %c0_4 = arith.constant 0 : index
    %3 = vector.load %arg3[%c0_3, %c0_4] : memref<1x128xf32, #tpu.memory_space<vmem>>, vector<1x128xf32>
    %4 = vector.broadcast %3 : vector<1x128xf32> to vector<16x128xf32>
    %5 = arith.addf %2, %4 : vector<16x128xf32>
    %cst_5 = arith.constant 0.000000e+00 : f32
    %6 = vector.broadcast %cst_5 : f32 to vector<16x128xf32>
    %7 = arith.maximumf %5, %6 : vector<16x128xf32>
    %c0_6 = arith.constant 0 : index
    %c0_7 = arith.constant 0 : index
    %8 = vector.load %arg4[%c0_6, %c0_7] : memref<128x128xf32, #tpu.memory_space<vmem>>, vector<128x128xf32>
    %cst_8 = arith.constant dense<0.000000e+00> : vector<16x128xf32>
    %9 = tpu.matmul %7, %8, %cst_8 {dimension_numbers = #tpu.dot_dimension_numbers<[1], [0], [0], [1], [0, 0, 1, 1], [], []>} : vector<16x128xf32>, vector<128x128xf32>, vector<16x128xf32> -> vector<16x128xf32>
    %c0_9 = arith.constant 0 : index
    %c0_10 = arith.constant 0 : index
    %10 = vector.load %arg5[%c0_9, %c0_10] : memref<1x128xf32, #tpu.memory_space<vmem>>, vector<1x128xf32>
    %11 = vector.broadcast %10 : vector<1x128xf32> to vector<16x128xf32>
    %12 = arith.addf %9, %11 : vector<16x128xf32>
    %13 = arith.negf %12 : vector<16x128xf32>
    %14 = math.exp %13 : vector<16x128xf32>
    %cst_11 = arith.constant 1.000000e+00 : f32
    %15 = vector.broadcast %cst_11 : f32 to vector<16x128xf32>
    %16 = arith.addf %15, %14 : vector<16x128xf32>
    %17 = arith.divf %15, %16 : vector<16x128xf32>
    %18 = arith.mulf %0, %17 : vector<16x128xf32>
    %c0_12 = arith.constant 0 : index
    %c0_13 = arith.constant 0 : index
    %19 = vector.load %arg6[%c0_12, %c0_13] : memref<16x128xf32, #tpu.memory_space<vmem>>, vector<16x128xf32>
    tpu.vector_store %arg6[%c0_12, %c0_13], %18 {strides = array<i32>} : memref<16x128xf32, #tpu.memory_space<vmem>>, vector<16x128xf32>,
    return
  }
  func.func @transform_0(%arg0: i32) -> (i32, i32) {
    %c0_i32 = arith.constant 0 : i32
    %c0_i32_0 = arith.constant 0 : i32
    return %arg0, %c0_i32 : i32, i32
  }
  func.func @transform_1(%arg0: i32) -> (i32, i32) {
    %c0_i32 = arith.constant 0 : i32
    %c0_i32_0 = arith.constant 0 : i32
    %c0_i32_1 = arith.constant 0 : i32
    return %c0_i32, %c0_i32_0 : i32, i32
  }
  func.func @transform_2(%arg0: i32) -> (i32, i32) {
    %c0_i32 = arith.constant 0 : i32
    %c0_i32_0 = arith.constant 0 : i32
    %c0_i32_1 = arith.constant 0 : i32
    return %c0_i32, %c0_i32_0 : i32, i32
  }
  func.func @transform_3(%arg0: i32) -> (i32, i32) {
    %c0_i32 = arith.constant 0 : i32
    %c0_i32_0 = arith.constant 0 : i32
    %c0_i32_1 = arith.constant 0 : i32
    return %c0_i32, %c0_i32_0 : i32, i32
  }
  func.func @transform_4(%arg0: i32) -> (i32, i32) {
    %c0_i32 = arith.constant 0 : i32
    %c0_i32_0 = arith.constant 0 : i32
    %c0_i32_1 = arith.constant 0 : i32
    return %c0_i32, %c0_i32_0 : i32, i32
  }
  func.func @transform_5(%arg0: i32) -> (i32, i32) {
    %c0_i32 = arith.constant 0 : i32
    %c0_i32_0 = arith.constant 0 : i32
    return %arg0, %c0_i32 : i32, i32
  }
}

</mosaic_0001>

<bundles_post_ra>
// kernel: tpu_custom_call.1
= control target key start
LH: loop header
LB: loop body
LE: loop exit
PB: predicated region body
PF: predicated region fallthrough
CT: control target
= control target key end

     0   :  { %10 = vsyncpa [#allocation3], 0  ;;  %s1208_s0 = inlined_call_operand.hbm [shape: f32[32,128], index: 0, kind: input, shape index: {}]   ;;  %s1209_s1 = inlined_call_operand.hbm [shape: f32[128,128], index: 1, kind: input, shape index: {}]   ;;  %s1210_s2 = inlined_call_operand.vmem [shape: f32[1,128], index: 2, kind: input, shape index: {}]   ;;  %s1211_s3 = inlined_call_operand.hbm [shape: f32[128,128], index: 3, kind: input, shape index: {}]   ;;  %s1212_s4 = inlined_call_operand.vmem [shape: f32[1,128], index: 4, kind: input, shape index: {}]   ;;  %s1213_s5 = inlined_call_operand.hbm [shape: f32[32,128], index: 5, kind: output, shape index: {}]  }
   0x1   :  { %12 = vsyncpa [#allocation3 + $0x1], 0 }
   0x2   :  { %13 = vsyncpa [#allocation6], 0 }
   0x3   :  { %14 = vsyncpa [#allocation4], 0 }
   0x4   :  { %16 = vsyncpa [#allocation4 + $0x1], 0  ;;  %s993_s18 = smov 0   ;;  %s995_s19 = smov 0  }
   0x5   :  { %s997_s20 = smov 0   ;;  %s999_s21 = smov 0  }
   0x6 LB: > { %s1014_s22 = sadd.s32 4294967295, %s953_s21   ;;  %s596_s23 = sadd.s32 4294967294, %s953_s21   ;;  %s953_s21 = sphi %s999_s21, %s1236_s21   ;;  %s949_s20 = sphi %s997_s20, %s1235_s20   ;;  %s945_s19 = sphi %s995_s19, %s1234_s19   ;;  %s941_s18 = sphi %s993_s18, %s1233_s18  }
   0x7   : > { %p42_p0 = scmp.ne.s32.totalorder %s945_s19, %s941_s18  ;;  %p1214_p1 = scmp.eq.s32.totalorder %s1014_s22, 0 }
   0x8   : > { %p150_p2 = scmp.eq.s32.totalorder %s1014_s22, 1  ;;  %p156_p3 = scmp.eq.s32.totalorder %s596_s23, 1 }
   0x9   : > { %p1023_p4 = por %p1214_p1, %p42_p0  ;;  %p597_p5 = scmp.ge.s32.totalorder %s953_s21, 1 }
   0xa   : > { %p1028_p6 = por %p156_p3, %p42_p0  ;;  %p163_p7 = scmp.lt.s32.totalorder %s953_s21, 3 }
   0xb   : > { %s1219_s24 = scalar_select %p1023_p4, 1, 0 }
   0xc   : > { %s1220_s25 = scalar_select %p1028_p6, 1, 0 }
   0xd   : > { %p1033_p8 = pnand %p597_p5, %p163_p7  ;;  %s955_s27 = smov [#allocation5]  }
   0xe   : > { %s175_s28 = sshll.u32 %s955_s27, 4  ;;  %s956_s30 = smov [#allocation7]   ;;  %s176_s28 = int_to_ptr.vmem [resolvable:$true] %s175_s28 }
   0xf   : > { %s1221_s26 = scalar_select %p1033_p8, 1, 0 }
  0x10   : > { %p738_p9 = pneg %p1033_p8  ;;  %s191_s6 = sshll.u32 %s956_s30, 4  ;;  %s192_s6 = int_to_ptr.vmem [resolvable:$true] %s191_s6 }
  0x11   : > { %s816_s7 = scalar_lea.vmem %s176_s28, 2048  ;;  %p824_p5 = scmp.lt.s32.totalorder %s176_s28, %s176_s28 }
  0x12   : > { %p1042_p11 = pnand %p738_p9, %p1214_p1  ;;  %p817_p13 = scmp.ne.s32.totalorder %s176_s28, %s816_s7 }
  0x13   : > { %p825_p7 = scmp.lt.s32.totalorder %s816_s7, %s816_s7 }
  0x14   : > { %p807_p12 = pneg %p1042_p11 }
  0x15   : > { %p826_p10 = por %p825_p7, %p824_p5 }
  0x16   : > { %p819_p0 = pnand %p817_p13, %p807_p12 }
  0x18   : > { %p820_p3 = pneg %p819_p0 }
  0x1a   : > { %p827_p9 = pnand %p826_p10, %p820_p3 }
  0x1c   : > { %830 = shalt.err (!%p827_p9)
}
  0x1d   : > { %s1215_s8 = smov 128   ;;  %s958_s9 = smov 8  }
  0x1e   : > { %741 = dma.hbm_to_vmem [thread:$0]  (!%p1042_p11), %s1209_s1, 2048, %s176_s28, [#allocation6], %s1215_s8, %s1215_s8, %s958_s9  }
  0x1f   : > { %s842_s12 = scalar_lea.vmem %s192_s6, 2048  ;;  %p850_p10 = scmp.lt.s32.totalorder %s192_s6, %s192_s6 }
  0x20   : > { %p843_p13 = scmp.ne.s32.totalorder %s192_s6, %s842_s12  ;;  %p851_p3 = scmp.lt.s32.totalorder %s842_s12, %s842_s12 }
  0x22   : > { %p845_p0 = pnand %p843_p13, %p807_p12  ;;  %p852_p7 = por %p851_p3, %p850_p10 }
  0x24   : > { %p846_p5 = pneg %p845_p0 }
  0x26   : > { %p853_p9 = pnand %p852_p7, %p846_p5 }
  0x28   : > { %856 = shalt.err (!%p853_p9)
}
  0x29   : > { %744 = dma.hbm_to_vmem [thread:$0]  (!%p1042_p11), %s1211_s3, 2048, %s192_s6, [#allocation6], %s1215_s8, %s1215_s8, %s958_s9  }
  0x2a   : > { %s1071_s15 = sadd.s32 1, %s953_s21   ;;  %s29_s16 = sadd.s32 1, %s949_s20 }
  0x2b   : > { %s26_s17 = ssub.s32 %s953_s21, %s1071_s15  ;;  %p36_p12 = scmp.ne.s32.totalorder %s949_s20, %s945_s19 }
  0x2c   : > { %p27_p13 = scmp.eq.s32.totalorder %s26_s17, 0  ;;  %p37_p0 = scmp.eq.s32.totalorder %s953_s21, 0 }
  0x2d   : > { %p1081_p5 = por %p150_p2, %p36_p12  ;;  %p755_p10 = scmp.lt.s32.totalorder %s953_s21, 2 }
  0x2e   : > { %s1087_s27 = scalar_select %p27_p13, %s949_s20, %s29_s16  }
  0x2f   : > { %s1223_s23 = scalar_select %p1081_p5, 1, 0 }
  0x30   : > { %p38_p3 = por %p37_p0, %p36_p12  ;;  %s208_s28 = sand.u32 1, %s949_s20  }
  0x31   : > { %s601_s29 = sshll.u32 %s208_s28, 4  ;;  %s618_s30 = sshll.u32 %s953_s21, 8 }
  0x32   : > { %s1094_s10 = scalar_lea.hbm %s1208_s0, %s618_s30  ;;  %s212_s11 = scalar_lea.vmem [#allocation2], %s601_s29 }
  0x33   : > { %s219_s12 = sshll.u32 %s212_s11, 4  ;;  %p1098_p2 = pnand %p755_p10, %p38_p3  ;;  %s1096_s12 = int_to_ptr.vmem [resolvable:$true] %s219_s12 }
  0x34   : > { %s1102_s14 = scalar_lea.sflag [#allocation3], %s208_s28  ;;  %s857_s16 = scalar_lea.hbm %s1094_s10, 256 }
  0x35   : > { %p858_p11 = scmp.ne.s32.totalorder %s1094_s10, %s857_s16  ;;  %p859_p7 = pneg %p1098_p2 }
  0x36   : > { %s862_s29 = scalar_lea.hbm %s1208_s0, 512  ;;  %p863_p13 = scmp.lt.s32.totalorder %s1094_s10, %s1208_s0 }
  0x37   : > { %p860_p9 = pnand %p859_p7, %p858_p11  ;;  %p864_p0 = scmp.lt.s32.totalorder %s862_s29, %s857_s16 }
  0x39   : > { %p861_p12 = pneg %p860_p9  ;;  %p865_p10 = por %p864_p0, %p863_p13 }
  0x3b   : > { %p866_p3 = pnand %p865_p10, %p861_p12 }
  0x3d   : > { %869 = shalt.err (!%p866_p3)
}
  0x3e   : > { %s870_s28 = scalar_lea.vmem %s1096_s12, 256  ;;  %s959_s11 = smov [#allocation2]  }
  0x3f   : > { %p871_p1 = scmp.ne.s32.totalorder %s1096_s12, %s870_s28  ;;  %s875_s8 = sshll.u32 %s959_s11, 4  ;;  %s876_s8 = int_to_ptr.vmem [resolvable:$false] %s875_s8 }
  0x40   : > { %s877_s17 = scalar_lea.vmem %s876_s8, 512  ;;  %p878_p9 = scmp.lt.s32.totalorder %s1096_s12, %s876_s8 }
  0x41   : > { %p873_p6 = pnand %p871_p1, %p859_p7  ;;  %p879_p5 = scmp.lt.s32.totalorder %s877_s17, %s870_s28 }
  0x43   : > { %p874_p11 = pneg %p873_p6  ;;  %p880_p4 = por %p879_p5, %p878_p9 }
  0x45   : > { %p881_p8 = pnand %p880_p4, %p874_p11 }
  0x47   : > { %884 = shalt.err (!%p881_p8)
}
  0x48   : > { %s1225_s16 = smov 128   ;;  %p1226_p1 = scmp.ne.s32.totalorder %s1221_s26, 0 }
  0x49   : > { %748 = dma.hbm_to_vmem [thread:$0]  (!%p1098_p2), %s1094_s10, 256, %s1096_s12, %s1102_s14, %s1225_s16, %s1225_s16, %s958_s9  }
  0x4a   : > { %231 = sbr.rel (%p1226_p1) target bundleno = 561 (0x231), region = 40  ;;  %s1129_s30 = sand.u32 (!%p1226_p1), 1, %s945_s19  }
  0x4b   : > { %s605_s8 = sshll.u32 (!%p1226_p1), %s1129_s30, 4  ;;  %s234_s29 = scalar_lea.sflag (!%p1226_p1), [#allocation3], %s1129_s30 }
  0x4c   : > { %s1135_s13 = scalar_lea.vmem (!%p1226_p1), [#allocation2], %s605_s8  ;;  %p1227_p4 = scmp.ne.s32.totalorder (!%p1226_p1), %s1219_s24, 0 }
  0x4f   : > { %928 = dma.done.wait (%p1227_p4), %s234_s29, 256  }
  0x50   : > { %930 = vsyncadd (%p1227_p4), %s234_s29, 4294967040  ;;  %p1228_p6 = scmp.eq.s32.totalorder %s1014_s22, 0 }
  0x52   : > { %932 = dma.done.wait (%p1228_p6), [#allocation6], 4096   ;;  %p1229_p8 = pmov %p1228_p6 }
  0x53   : > { %v291_v0 = vld [vmem:[#allocation5 + $0x78] sm:$0xff]  ;;  %v290_v1 = vld [vmem:[#allocation5 + $0x70] sm:$0xff]  ;;  %v289_v2 = vld [vmem:[#allocation5 + $0x68] sm:$0xff]  ;;  %s619_s12 = sshll.u32 %s1014_s22, 8  ;;  %s271_s14 = scalar_lea.vmem [#allocation8], %s605_s8 }
  0x54   : > { %934 = vsyncadd (%p1229_p8), [#allocation6], 4294963200  ;;  %656 = vmatprep.subr.mxu0 %v291_v0  ;;  %v288_v3 = vld [vmem:[#allocation5 + $0x60] sm:$0xff]  ;;  %v287_v5 = vld [vmem:[#allocation5 + $0x58] sm:$0xff]  ;;  %s504_s6 = sshll.u32 %s271_s14, 4  ;;  %s1162_s11 = scalar_lea.hbm %s1213_s5, %s619_s12  ;;  %s1164_s6 = int_to_ptr.vmem [resolvable:$true] %s504_s6 }
  0x55   : > { %657 = vmatpush3.msra.mxu0 %v291_v0  ;;  %v1146_v4 = vld [vmem:[%s1135_s13] sm:$0xff]  ;;  %v391_v6 = vld [vmem:[#allocation7 + $0x78] sm:$0xff]  ;;  %v389_v9 = vld [vmem:[#allocation7 + $0x68] sm:$0xff]  ;;  %s491_s22 = scalar_lea.sflag [#allocation4], %s1129_s30  ;;  %s885_s17 = scalar_lea.vmem %s1164_s6, 256 }
  0x56   : > { %658 = vmatprep.subr.mxu0 %v290_v1  ;;  %688 = vmatprep.mubr.f32.mxu0 %v1146_v4  ;;  %v390_v7 = vld [vmem:[#allocation7 + $0x70] sm:$0xff]  ;;  %v285_v10 = vld [vmem:[#allocation5 + $0x48] sm:$0xff]  ;;  %v388_v11 = vld [vmem:[#allocation7 + $0x60] sm:$0xff]  ;;  %p886_p5 = scmp.ne.s32.totalorder %s1164_s6, %s885_s17  ;;  %p1230_p2 = scmp.ne.s32.totalorder %s1223_s23, 0 }
  0x57   : > { %659 = vmatpush3.msra.mxu0 %v290_v1  ;;  %691 = vmatprep.subr.mxu1 %v391_v6  ;;  %v286_v8 = vld [vmem:[#allocation5 + $0x50] sm:$0xff]  ;;  %v284_v12 = vld [vmem:[#allocation5 + $0x40] sm:$0xff]  ;;  %v387_v13 = vld [vmem:[#allocation7 + $0x58] sm:$0xff]  ;;  %s960_s16 = smov [#allocation8]  }
  0x58   : > { %660 = vmatprep.subr.mxu0 %v289_v2  ;;  %692 = vmatpush3.msra.mxu1 %v391_v6  ;;  %v283_v14 = vld [vmem:[#allocation5 + $0x38] sm:$0xff]  ;;  %v386_v15 = vld [vmem:[#allocation7 + $0x50] sm:$0xff]  ;;  %v385_v17 = vld [vmem:[#allocation7 + $0x48] sm:$0xff]  ;;  %p887_p7 = pnand %p886_p5, %p1230_p2  ;;  %s889_s8 = sshll.u32 %s960_s16, 4  ;;  %s890_s8 = int_to_ptr.vmem [resolvable:$false] %s889_s8 }
  0x59   : > { %661 = vmatpush3.msra.mxu0 %v289_v2  ;;  %693 = vmatprep.subr.mxu1 %v390_v7  ;;  %v282_v16 = vld [vmem:[#allocation5 + $0x30] sm:$0xff]  ;;  %v281_v18 = vld [vmem:[#allocation5 + $0x28] sm:$0xff]  ;;  %v384_v19 = vld [vmem:[#allocation7 + $0x40] sm:$0xff]  ;;  %s891_s29 = scalar_lea.vmem %s890_s8, 512  ;;  %p892_p13 = scmp.lt.s32.totalorder %s1164_s6, %s890_s8 }
  0x5a   : > { %662 = vmatprep.subr.mxu0 %v288_v3  ;;  %694 = vmatpush3.msra.mxu1 %v390_v7  ;;  %v280_v20 = vld [vmem:[#allocation5 + $0x20] sm:$0xff]  ;;  %v383_v21 = vld [vmem:[#allocation7 + $0x38] sm:$0xff]  ;;  %v382_v23 = vld [vmem:[#allocation7 + $0x30] sm:$0xff]  ;;  %p888_p12 = pneg %p887_p7  ;;  %p893_p0 = scmp.lt.s32.totalorder %s891_s29, %s885_s17 }
  0x5b   : > { %663 = vmatpush3.msra.mxu0 %v288_v3  ;;  %695 = vmatprep.subr.mxu1 %v389_v9  ;;  %v279_v22 = vld [vmem:[#allocation5 + $0x18] sm:$0xff]  ;;  %v278_v24 = vld [vmem:[#allocation5 + $0x10] sm:$0xff]  ;;  %v381_v25 = vld [vmem:[#allocation7 + $0x28] sm:$0xff] }
  0x5c   : > { %664 = vmatprep.subr.mxu0 %v287_v5  ;;  %696 = vmatpush3.msra.mxu1 %v389_v9  ;;  %v277_v26 = vld [vmem:[#allocation5 + $0x8] sm:$0xff]  ;;  %v380_v27 = vld [vmem:[#allocation7 + $0x20] sm:$0xff]  ;;  %v379_v30 = vld [vmem:[#allocation7 + $0x18] sm:$0xff]  ;;  %p894_p10 = por %p893_p0, %p892_p13 }
  0x5d   : > { %665 = vmatpush3.msra.mxu0 %v287_v5  ;;  %697 = vmatprep.subr.mxu1 %v388_v11  ;;  %v276_v28 = vld [vmem:[#allocation5] sm:$0xff]  ;;  %v275_v29 = vld [vmem:[%s1135_s13 + $0x8] sm:$0xff]  ;;  %v378_v31 = vld [vmem:[#allocation7 + $0x10] sm:$0xff] }
  0x5e   : > { %666 = vmatprep.subr.mxu0 %v286_v8  ;;  %698 = vmatpush3.msra.mxu1 %v388_v11  ;;  %v377_v32 = vld [vmem:[#allocation7 + $0x8] sm:$0xff]  ;;  %v376_v33 = vld [vmem:[#allocation7] sm:$0xff]  ;;  %p895_p3 = pnand %p894_p10, %p888_p12 }
  0x5f   : > { %667 = vmatpush3.msra.mxu0 %v286_v8  ;;  %699 = vmatprep.subr.mxu1 %v387_v13  ;;  %v609_v34 = vld [vmem:[%s1210_s2] ss:$0 sm:$0xff] }
  0x60   : > { %668 = vmatprep.subr.mxu0 %v285_v10  ;;  %700 = vmatpush3.msra.mxu1 %v387_v13  ;;  %v610_v41 = vld [vmem:[%s1212_s4] ss:$0 sm:$0xff] }
  0x61   : > { %669 = vmatpush3.msra.mxu0 %v285_v10  ;;  %701 = vmatprep.subr.mxu1 %v386_v15 }
  0x62   : > { %670 = vmatprep.subr.mxu0 %v284_v12  ;;  %702 = vmatpush3.msra.mxu1 %v386_v15 }
  0x63   : > { %671 = vmatpush3.msra.mxu0 %v284_v12  ;;  %703 = vmatprep.subr.mxu1 %v385_v17 }
  0x64   : > { %672 = vmatprep.subr.mxu0 %v283_v14  ;;  %704 = vmatpush3.msra.mxu1 %v385_v17 }
  0x65   : > { %673 = vmatpush3.msra.mxu0 %v283_v14  ;;  %705 = vmatprep.subr.mxu1 %v384_v19 }
  0x66   : > { %674 = vmatprep.subr.mxu0 %v282_v16  ;;  %706 = vmatpush3.msra.mxu1 %v384_v19 }
  0x67   : > { %675 = vmatpush3.msra.mxu0 %v282_v16  ;;  %707 = vmatprep.subr.mxu1 %v383_v21 }
  0x68   : > { %676 = vmatprep.subr.mxu0 %v281_v18  ;;  %708 = vmatpush3.msra.mxu1 %v383_v21 }
  0x69   : > { %677 = vmatpush3.msra.mxu0 %v281_v18  ;;  %709 = vmatprep.subr.mxu1 %v382_v23 }
  0x6a   : > { %678 = vmatprep.subr.mxu0 %v280_v20  ;;  %710 = vmatpush3.msra.mxu1 %v382_v23 }
  0x6b   : > { %679 = vmatpush3.msra.mxu0 %v280_v20  ;;  %711 = vmatprep.subr.mxu1 %v381_v25 }
  0x6c   : > { %680 = vmatprep.subr.mxu0 %v279_v22  ;;  %712 = vmatpush3.msra.mxu1 %v381_v25 }
  0x6d   : > { %681 = vmatpush3.msra.mxu0 %v279_v22  ;;  %713 = vmatprep.subr.mxu1 %v380_v27 }
  0x6e   : > { %682 = vmatprep.subr.mxu0 %v278_v24  ;;  %714 = vmatpush3.msra.mxu1 %v380_v27 }
  0x6f   : > { %683 = vmatpush3.msra.mxu0 %v278_v24  ;;  %715 = vmatprep.subr.mxu1 %v379_v30 }
  0x70   : > { %684 = vmatprep.subr.mxu0 %v277_v26  ;;  %716 = vmatpush3.msra.mxu1 %v379_v30 }
  0x71   : > { %685 = vmatpush3.msra.mxu0 %v277_v26  ;;  %717 = vmatprep.subr.mxu1 %v378_v31 }
  0x72   : > { %686 = vmatprep.subr.mxu0 %v276_v28  ;;  %718 = vmatpush3.msra.mxu1 %v378_v31 }
  0x73   : > { %687 = vmatpush3.msra.mxu0 %v276_v28  ;;  %719 = vmatprep.subr.mxu1 %v377_v32 }
  0x74   : > { %689 = vmatmul.mubr.f32.vlgmr.msra.gmra.mxu0 %v275_v29  ;;  %720 = vmatpush3.msra.mxu1 %v377_v32 }
  0x75   : > { %721 = vmatprep.subr.mxu1 %v376_v33 }
  0x76   : > { %722 = vmatpush3.msra.mxu1 %v376_v33 }
 0x134   : > { %v690_v35 = vpop.f32.mrf.mxu0 }
 0x135   : > { %v371_v36 = vadd.f32 %v690_v35, %v609_v34 }
 0x136   : > { %v365_v37 = vpop.f32.mrf.mxu0 }
 0x137   : > { %v366_v38 = vadd.f32 %v609_v34, %v365_v37  ;;  %v375_v40 = vmax.f32 %v371_v36, 0.0 }
 0x139   : > { %v374_v39 = vmax.f32 %v366_v38, 0.0 }
 0x13b   : > { %723 = vmatprep.mubr.f32.mxu1 %v374_v39 }
 0x13c   : > { %724 = vmatmul.mubr.f32.vlgmr.msra.gmra.mxu1 %v375_v40 }
 0x1fc   : > { %v725_v42 = vpop.f32.mrf.mxu1 }
 0x1fd   : > { %v471_v43 = vadd.f32 %v725_v42, %v610_v41 }
 0x1fe   : > { %v465_v44 = vpop.f32.mrf.mxu1 }
 0x1ff   : > { %v612_v45 = vmul.f32 -1.442695, %v471_v43  ;;  %v466_v46 = vadd.f32 %v610_v41, %v465_v44 }
 0x201   : > { %797 = vpow2.f32 %v612_v45  ;;  %v611_v47 = vmul.f32 -1.442695, %v466_v46 }
 0x203   : > { %799 = vpow2.f32 %v611_v47 }
 0x20e   : > { %v798_v48 = vpop.eup %797 }
 0x20f   : > { %v481_v49 = vadd.f32 1.0, %v798_v48 }
 0x210   : > { %v800_v50 = vpop.eup %799 }
 0x211   : > { %801 = vrcp.f32 %v481_v49  ;;  %v480_v51 = vadd.f32 1.0, %v800_v50 }
 0x213   : > { %803 = vrcp.f32 %v480_v51 }
 0x21e   : > { %v802_v52 = vpop.eup %801 }
 0x21f   : > { %v487_v53 = vmul.f32 %v802_v52, %v275_v29 }
 0x220   : > { %v804_v54 = vpop.eup %803 }
 0x221   : > { %v486_v55 = vmul.f32 %v804_v54, %v1146_v4  ;;  %489 = vst [vmem:[%s271_s14 + $0x8] sm:$0xff] %v487_v53 }
 0x223   : > { %488 = vst [vmem:[%s271_s14] sm:$0xff] %v486_v55 }
 0x224   : > { %898 = shalt.err (!%p895_p3)
}
 0x225   : > { %s899_s13 = scalar_lea.hbm %s1162_s11, 256  ;;  %s903_s9 = scalar_lea.hbm %s1213_s5, 512 }
 0x226   : > { %p900_p11 = scmp.ne.s32.totalorder %s1162_s11, %s899_s13  ;;  %p904_p4 = scmp.lt.s32.totalorder %s1162_s11, %s1213_s5 }
 0x227   : > { %p905_p6 = scmp.lt.s32.totalorder %s903_s9, %s899_s13 }
 0x228   : > { %p901_p9 = pnand %p900_p11, %p1230_p2 }
 0x229   : > { %p906_p8 = por %p905_p6, %p904_p4 }
 0x22a   : > { %p902_p1 = pneg %p901_p9 }
 0x22c   : > { %p907_p5 = pnand %p906_p8, %p902_p1 }
 0x22e   : > { %910 = shalt.err (!%p907_p5)
}
 0x22f   : > { %s961_s14 = smov 128   ;;  %s962_s7 = smov 8  }
 0x230   : > { %736 = dma.vmem_to_hbm [thread:$0]  (%p1230_p2), %s1164_s6, 256, %s1162_s11, %s491_s22, %s961_s14, %s961_s14, %s962_s7  }
 0x231 PF: > { %s519_s28 = sand.u32 1, %s941_s18   ;;  %p1231_p7 = scmp.ne.s32.totalorder %s1220_s25, 0 }
 0x232   : > { %p1232_p12 = scmp.ge.s32.totalorder %s953_s21, 2  ;;  %s520_s17 = scalar_lea.sflag [#allocation4], %s519_s28 }
 0x234   : > { %p750_p13 = pnand %p1232_p12, %p1231_p7 }
 0x236   : > { %p751_p0 = pneg %p750_p13 }
 0x238   : > { %936 = dma.done.wait (%p751_p0), %s520_s17, 256  }
 0x239   : > { %938 = vsyncadd (%p751_p0), %s520_s17, 4294967040  ;;  %p19_p10 = scmp.ge.s32.totalorder %s1071_s15, 4   ;;  %s1233_s18 = smov %s945_s19 }
 0x23a   : > { %s1234_s19 = smov %s949_s20  ;;  %s1235_s20 = smov %s1087_s27 }
 0x23b   : > { %s1236_s21 = smov %s1071_s15  ;;  %21 = sbr.rel (!%p19_p10) target bundleno = 6 (0x6), region = 93 }
 0x240   :  { %525 = vsyncpa [#allocation3], 1 }
 0x241   :  { %527 = vsyncpa [#allocation3 + $0x1], 1 }
 0x242   :  { %528 = vsyncpa [#allocation6], 1 }
 0x243   :  { %529 = vsyncpa [#allocation4], 1 }
 0x244   :  { %531 = vsyncpa [#allocation4 + $0x1], 1 }

</bundles_post_ra>
